<compile_context>
chip_gen: v7x
topology: tpu7x:2x2x1
jax: 0.10.0
libtpu: 0.0.40
codegen_flags: <defaults>
</compile_context>

<pallas_src>
import functools

import numpy as np

import jax
import jax.numpy as jnp
from jax.experimental import pallas as pl
from jax.experimental.pallas import tpu as pltpu

_LANE = 128
_SUBLANE = 16  # bf16-friendly row granule for the batch tile


def _round_up(n, m):
    return ((n + m - 1) // m) * m


def _cdiv(a, b):
    return -(-a // b)


def _leaky_relu(x, slope=0.2):
    return jnp.where(x > 0, x, slope * x)


def mlp_kernel(x_ref,
               w1_ref, b1_ref,
               w2_ref, b2_ref,
               w3_ref, b3_ref,
               w4_ref, b4_ref,
               o_ref):
    # x tile arrives in its HBM dtype (f32); cast to bf16 on the VPU right before
    # the first MXU op. Every matmul accumulates in f32; bias add + leaky-relu stay
    # in f32; cast back to bf16 only as the input of the next matmul.
    x = x_ref[...].astype(jnp.bfloat16)

    h = jnp.dot(x, w1_ref[...], preferred_element_type=jnp.float32) + b1_ref[...]
    h = _leaky_relu(h)

    h = jnp.dot(h.astype(jnp.bfloat16), w2_ref[...],
                preferred_element_type=jnp.float32) + b2_ref[...]
    h = _leaky_relu(h)

    h = jnp.dot(h.astype(jnp.bfloat16), w3_ref[...],
                preferred_element_type=jnp.float32) + b3_ref[...]
    h = _leaky_relu(h)

    out = jnp.dot(h.astype(jnp.bfloat16), w4_ref[...],
                  preferred_element_type=jnp.float32) + b4_ref[...]
    o_ref[...] = out.astype(o_ref.dtype)


def prepare_params(params):
    """One-time pad/cast of the 4 Linear layers into the kernel's resident layout.

    params: (w1, b1, w2, b2, w3, b3, w4, b4), each w_i of shape (in, out) so that
    y = x @ w + b (PyTorch nn.Linear weight transposed). Zero-padding to 128-lane
    multiples is semantics-preserving: padded x columns hit zero weight rows, padded
    hidden columns get zero pre-activation (bias also zero-padded) and
    leaky_relu(0) = 0, padded output columns are sliced off after the kernel.

    Returns (padded_arrays_tuple, nin, nout). Call once; reuse across forwards.
    """
    (w1, b1, w2, b2, w3, b3, w4, b4) = params
    nin, nh = w1.shape
    nout = w4.shape[1]
    nin_p, nh_p, nout_p = (_round_up(d, _LANE) for d in (nin, nh, nout))

    def pad2(a, rows, cols, dtype):
        a = jnp.asarray(a)
        if a.ndim == 1:
            a = a[None, :]
        return jnp.pad(a, ((0, rows - a.shape[0]), (0, cols - a.shape[1]))).astype(dtype)

    arrays = (
        pad2(w1, nin_p, nh_p, jnp.bfloat16), pad2(b1, 1, nh_p, jnp.float32),
        pad2(w2, nh_p, nh_p, jnp.bfloat16), pad2(b2, 1, nh_p, jnp.float32),
        pad2(w3, nh_p, nh_p, jnp.bfloat16), pad2(b3, 1, nh_p, jnp.float32),
        pad2(w4, nh_p, nout_p, jnp.bfloat16), pad2(b4, 1, nout_p, jnp.float32),
    )
    return arrays, nin, nout


@functools.partial(
    jax.jit,
    static_argnames=("nout", "tile_b", "single_buffer", "out_dtype", "vmem_limit"),
)
def _mlp_forward_impl(x, w1, b1, w2, b2, w3, b3, w4, b4, *,
                      nout, tile_b, single_buffer, out_dtype, vmem_limit):
    B, nin = x.shape
    nin_p, nh_p = w1.shape
    nout_p = w4.shape[1]

    B_p = _round_up(B, tile_b)
    # Pad x only when actually required (common production case skips this pass).
    if B_p != B or nin_p != nin:
        x = jnp.pad(x, ((0, B_p - B), (0, nin_p - nin)))

    grid = (B_p // tile_b,)

    def const_spec(shape):
        # Constant block index -> DMA'd once, resident in VMEM across grid steps.
        if single_buffer:
            return pl.BlockSpec(shape, lambda i: (0, 0), pipeline_mode=pl.Buffered(1))
        return pl.BlockSpec(shape, lambda i: (0, 0))

    in_specs = [
        pl.BlockSpec((tile_b, nin_p), lambda i: (i, 0)),       # x tile (pipelined)
        const_spec((nin_p, nh_p)), const_spec((1, nh_p)),      # w1, b1
        const_spec((nh_p, nh_p)), const_spec((1, nh_p)),       # w2, b2
        const_spec((nh_p, nh_p)), const_spec((1, nh_p)),       # w3, b3
        const_spec((nh_p, nout_p)), const_spec((1, nout_p)),   # w4, b4
    ]
    out_specs = pl.BlockSpec((tile_b, nout_p), lambda i: (i, 0))

    weight_elems = nin_p * nh_p + 2 * nh_p * nh_p + nh_p * nout_p
    flops = 2 * B_p * weight_elems
    bytes_accessed = (B_p * nin_p * x.dtype.itemsize
                      + 2 * weight_elems + 4 * (3 * nh_p + nout_p)
                      + B_p * nout_p * np.dtype(out_dtype).itemsize)
    cost = pl.CostEstimate(flops=flops, transcendentals=0,
                           bytes_accessed=bytes_accessed)

    out_p = pl.pallas_call(
        mlp_kernel,
        out_shape=jax.ShapeDtypeStruct((B_p, nout_p), out_dtype),
        grid=grid,
        in_specs=in_specs,
        out_specs=out_specs,
        compiler_params=pltpu.CompilerParams(
            dimension_semantics=("parallel",),
            vmem_limit_bytes=vmem_limit,
        ),
        cost_estimate=cost,
    )(x, w1, b1, w2, b2, w3, b3, w4, b4)

    if B_p != B or nout_p != nout:
        out_p = out_p[:B, :nout]
    return out_p


# Lazily probed: does this jax/backend accept single-buffered (pl.Buffered(1))
# constant-index BlockSpecs? Cached so the probe cost is paid at most once.
_SINGLE_BUFFER_OK = None


def _vmem_capacity_bytes():
    try:
        return int(pltpu.get_tpu_info().vmem_capacity_bytes)
    except Exception:
        return 64 * 1024 * 1024  # conservative: v7x per-TensorCore VMEM


def mlp_forward(x, prepared, *, tile_b=None, out_dtype=None):
    """Fused MLP forward. `prepared` comes from prepare_params() (call it once)."""
    arrays, _nin, nout = prepared
    w1 = arrays[0]
    w4 = arrays[6]
    nin_p, nh_p = w1.shape
    nout_p = w4.shape[1]
    B = x.shape[0]
    out_dtype = np.dtype(x.dtype if out_dtype is None else out_dtype)

    vmem_cap = _vmem_capacity_bytes()
    budget = min(int(vmem_cap * 0.85), 100 * 1024 * 1024)

    weight_bytes = 2 * (nin_p * nh_p + 2 * nh_p * nh_p + nh_p * nout_p)  # bf16
    bias_bytes = 4 * (3 * nh_p + nout_p)                                 # f32
    # TODO(synk): add a hidden-dim (K/N) tiled fallback (e.g. pltpu.emit_pipeline
    # over w2/w3 chunks) when resident bf16 weights no longer fit the VMEM budget
    # (roughly nh >= ~2500 on v7x's 64 MiB VMEM).

    # Per-row VMEM cost of one batch tile: double-buffered x/out tiles + f32 h's.
    row_bytes = (2 * nin_p * x.dtype.itemsize
                 + 2 * nout_p * out_dtype.itemsize
                 + 4 * nh_p * 4)

    if tile_b is None:
        # Divisor-aware tile: minimize over-padding, keep >= 2 grid steps when B is
        # large enough (v7x's 2 TensorCores shard the "parallel" axis), and use
        # bigger tiles on 128-MiB-VMEM parts (v5e/v6e) to amortize per-step overhead.
        target = 1024 if vmem_cap >= 96 * 1024 * 1024 else 512
        n_steps = max(1, _cdiv(B, target))
        if n_steps == 1 and B >= 32:
            n_steps = 2
        tile_b = _round_up(_cdiv(B, n_steps), _SUBLANE)
    else:
        tile_b = _round_up(int(tile_b), _SUBLANE)
    # Shrink the tile if IO/activations would not fit next to (worst-case 2x) weights.
    while tile_b > _SUBLANE and (
            2 * (weight_bytes + bias_bytes) + tile_b * row_bytes > budget):
        tile_b = _round_up(tile_b // 2, _SUBLANE)

    def _limit(single_buffer):
        w_mult = 1 if single_buffer else 2
        est = w_mult * (weight_bytes + bias_bytes) + tile_b * row_bytes
        return int(min(max(int(est * 1.25), 32 * 1024 * 1024), budget))

    common = dict(nout=nout, tile_b=tile_b, out_dtype=out_dtype)

    global _SINGLE_BUFFER_OK
    if _SINGLE_BUFFER_OK is None:
        try:
            out = jax.block_until_ready(
                _mlp_forward_impl(x, *arrays, single_buffer=True,
                                  vmem_limit=_limit(True), **common))
            _SINGLE_BUFFER_OK = True
            return out
        except Exception:
            _SINGLE_BUFFER_OK = False
    if _SINGLE_BUFFER_OK:
        return _mlp_forward_impl(x, *arrays, single_buffer=True,
                                 vmem_limit=_limit(True), **common)
    return _mlp_forward_impl(x, *arrays, single_buffer=False,
                             vmem_limit=_limit(False), **common)


def init_params(key, nin, nout, nh, dtype=jnp.float32):
    ks = jax.random.split(key, 8)

    def linear(kw, kb, fan_in, fan_out):
        # Kaiming-uniform-like bound, as in torch.nn.Linear default init.
        bound = 1.0 / jnp.sqrt(fan_in)
        w = jax.random.uniform(kw, (fan_in, fan_out), dtype, -bound, bound)
        b = jax.random.uniform(kb, (1, fan_out), dtype, -bound, bound)
        return w, b

    w1, b1 = linear(ks[0], ks[1], nin, nh)
    w2, b2 = linear(ks[2], ks[3], nh, nh)
    w3, b3 = linear(ks[4], ks[5], nh, nh)
    w4, b4 = linear(ks[6], ks[7], nh, nout)
    return (w1, b1, w2, b2, w3, b3, w4, b4)


def mlp_reference(x, params):
    (w1, b1, w2, b2, w3, b3, w4, b4) = params

    def lrelu(z):
        return jnp.where(z > 0, z, 0.2 * z)

    h = lrelu(x @ w1 + b1)
    h = lrelu(h @ w2 + b2)
    h = lrelu(h @ w3 + b3)
    return h @ w4 + b4


if __name__ == "__main__":
    key = jax.random.PRNGKey(0)
    k_x, k_p = jax.random.split(key)

    batch, nin, nout, nh = 8, 4, 4, 32
    x = jax.random.normal(k_x, (batch, nin), dtype=jnp.float32)
    params = init_params(k_p, nin, nout, nh)

    prepared = prepare_params(params)  # one-time pad/cast, reused across forwards

    out = mlp_forward(x, prepared)
    out = jax.block_until_ready(out)

    ref = mlp_reference(x, params)
    assert out.shape == (batch, nout)
    # bf16 matmul inputs with f32 accumulation -> relaxed tolerance vs f32 reference.
    err = jnp.max(jnp.abs(out - ref))
    assert jnp.allclose(out, ref, atol=5e-2, rtol=5e-2), f"max abs err {err}"

    print("KERNEL_OK")
</pallas_src>

<mosaic_0001>
module attributes {stable_mosaic.version = 11 : i64} {
  func.func @mlp_kernel(%arg0: i32, %arg1: memref<16x128xf32, #tpu.memory_space<vmem>>, %arg2: memref<128x128xbf16, #tpu.memory_space<vmem>>, %arg3: memref<1x128xf32, #tpu.memory_space<vmem>>, %arg4: memref<128x128xbf16, #tpu.memory_space<vmem>>, %arg5: memref<1x128xf32, #tpu.memory_space<vmem>>, %arg6: memref<128x128xbf16, #tpu.memory_space<vmem>>, %arg7: memref<1x128xf32, #tpu.memory_space<vmem>>, %arg8: memref<128x128xbf16, #tpu.memory_space<vmem>>, %arg9: memref<1x128xf32, #tpu.memory_space<vmem>>, %arg10: memref<16x128xf32, #tpu.memory_space<vmem>>) attributes {dimension_semantics = [#tpu.dimension_semantics<parallel>], iteration_bounds = array<i64: 1>, scalar_prefetch = 0 : i64, scratch_operands = 0 : i64, tpu.core_type = #tpu.core_type<tc>, window_params = [{transform_indices = @transform_0, window_bounds = array<i64: 16, 128>}, {pipeline_mode = #tpu.pipeline_mode<synchronous>, transform_indices = @transform_1, window_bounds = array<i64: 128, 128>}, {pipeline_mode = #tpu.pipeline_mode<synchronous>, transform_indices = @transform_2, window_bounds = array<i64: 1, 128>}, {pipeline_mode = #tpu.pipeline_mode<synchronous>, transform_indices = @transform_3, window_bounds = array<i64: 128, 128>}, {pipeline_mode = #tpu.pipeline_mode<synchronous>, transform_indices = @transform_4, window_bounds = array<i64: 1, 128>}, {pipeline_mode = #tpu.pipeline_mode<synchronous>, transform_indices = @transform_5, window_bounds = array<i64: 128, 128>}, {pipeline_mode = #tpu.pipeline_mode<synchronous>, transform_indices = @transform_6, window_bounds = array<i64: 1, 128>}, {pipeline_mode = #tpu.pipeline_mode<synchronous>, transform_indices = @transform_7, window_bounds = array<i64: 128, 128>}, {pipeline_mode = #tpu.pipeline_mode<synchronous>, transform_indices = @transform_8, window_bounds = array<i64: 1, 128>}, {transform_indices = @transform_9, window_bounds = array<i64: 16, 128>}]} {
    %c0 = arith.constant 0 : index
    %c0_0 = arith.constant 0 : index
    %0 = vector.load %arg1[%c0, %c0_0] : memref<16x128xf32, #tpu.memory_space<vmem>>, vector<16x128xf32>
    %1 = arith.truncf %0 : vector<16x128xf32> to vector<16x128xbf16>
    %c0_1 = arith.constant 0 : index
    %c0_2 = arith.constant 0 : index
    %2 = vector.load %arg2[%c0_1, %c0_2] : memref<128x128xbf16, #tpu.memory_space<vmem>>, vector<128x128xbf16>
    %cst = arith.constant dense<0.000000e+00> : vector<16x128xf32>
    %3 = tpu.matmul %1, %2, %cst {dimension_numbers = #tpu.dot_dimension_numbers<[1], [0], [0], [1], [0, 0, 1, 1], [], []>} : vector<16x128xbf16>, vector<128x128xbf16>, vector<16x128xf32> -> vector<16x128xf32>
    %c0_3 = arith.constant 0 : index
    %c0_4 = arith.constant 0 : index
    %4 = vector.load %arg3[%c0_3, %c0_4] : memref<1x128xf32, #tpu.memory_space<vmem>>, vector<1x128xf32>
    %5 = vector.broadcast %4 : vector<1x128xf32> to vector<16x128xf32>
    %6 = arith.addf %3, %5 : vector<16x128xf32>
    %cst_5 = arith.constant 0.000000e+00 : f32
    %7 = vector.broadcast %cst_5 : f32 to vector<16x128xf32>
    %8 = arith.cmpf ogt, %6, %7 : vector<16x128xf32>
    %cst_6 = arith.constant 2.000000e-01 : f32
    %9 = vector.broadcast %cst_6 : f32 to vector<16x128xf32>
    %10 = arith.mulf %9, %6 : vector<16x128xf32>
    %11 = arith.select %8, %6, %10 : vector<16x128xi1>, vector<16x128xf32>
    %12 = arith.truncf %11 : vector<16x128xf32> to vector<16x128xbf16>
    %c0_7 = arith.constant 0 : index
    %c0_8 = arith.constant 0 : index
    %13 = vector.load %arg4[%c0_7, %c0_8] : memref<128x128xbf16, #tpu.memory_space<vmem>>, vector<128x128xbf16>
    %cst_9 = arith.constant dense<0.000000e+00> : vector<16x128xf32>
    %14 = tpu.matmul %12, %13, %cst_9 {dimension_numbers = #tpu.dot_dimension_numbers<[1], [0], [0], [1], [0, 0, 1, 1], [], []>} : vector<16x128xbf16>, vector<128x128xbf16>, vector<16x128xf32> -> vector<16x128xf32>
    %c0_10 = arith.constant 0 : index
    %c0_11 = arith.constant 0 : index
    %15 = vector.load %arg5[%c0_10, %c0_11] : memref<1x128xf32, #tpu.memory_space<vmem>>, vector<1x128xf32>
    %16 = vector.broadcast %15 : vector<1x128xf32> to vector<16x128xf32>
    %17 = arith.addf %14, %16 : vector<16x128xf32>
    %cst_12 = arith.constant 0.000000e+00 : f32
    %18 = vector.broadcast %cst_12 : f32 to vector<16x128xf32>
    %19 = arith.cmpf ogt, %17, %18 : vector<16x128xf32>
    %cst_13 = arith.constant 2.000000e-01 : f32
    %20 = vector.broadcast %cst_13 : f32 to vector<16x128xf32>
    %21 = arith.mulf %20, %17 : vector<16x128xf32>
    %22 = arith.select %19, %17, %21 : vector<16x128xi1>, vector<16x128xf32>
    %23 = arith.truncf %22 : vector<16x128xf32> to vector<16x128xbf16>
    %c0_14 = arith.constant 0 : index
    %c0_15 = arith.constant 0 : index
    %24 = vector.load %arg6[%c0_14, %c0_15] : memref<128x128xbf16, #tpu.memory_space<vmem>>, vector<128x128xbf16>
    %cst_16 = arith.constant dense<0.000000e+00> : vector<16x128xf32>
    %25 = tpu.matmul %23, %24, %cst_16 {dimension_numbers = #tpu.dot_dimension_numbers<[1], [0], [0], [1], [0, 0, 1, 1], [], []>} : vector<16x128xbf16>, vector<128x128xbf16>, vector<16x128xf32> -> vector<16x128xf32>
    %c0_17 = arith.constant 0 : index
    %c0_18 = arith.constant 0 : index
    %26 = vector.load %arg7[%c0_17, %c0_18] : memref<1x128xf32, #tpu.memory_space<vmem>>, vector<1x128xf32>
    %27 = vector.broadcast %26 : vector<1x128xf32> to vector<16x128xf32>
    %28 = arith.addf %25, %27 : vector<16x128xf32>
    %cst_19 = arith.constant 0.000000e+00 : f32
    %29 = vector.broadcast %cst_19 : f32 to vector<16x128xf32>
    %30 = arith.cmpf ogt, %28, %29 : vector<16x128xf32>
    %cst_20 = arith.constant 2.000000e-01 : f32
    %31 = vector.broadcast %cst_20 : f32 to vector<16x128xf32>
    %32 = arith.mulf %31, %28 : vector<16x128xf32>
    %33 = arith.select %30, %28, %32 : vector<16x128xi1>, vector<16x128xf32>
    %34 = arith.truncf %33 : vector<16x128xf32> to vector<16x128xbf16>
    %c0_21 = arith.constant 0 : index
    %c0_22 = arith.constant 0 : index
    %35 = vector.load %arg8[%c0_21, %c0_22] : memref<128x128xbf16, #tpu.memory_space<vmem>>, vector<128x128xbf16>
    %cst_23 = arith.constant dense<0.000000e+00> : vector<16x128xf32>
    %36 = tpu.matmul %34, %35, %cst_23 {dimension_numbers = #tpu.dot_dimension_numbers<[1], [0], [0], [1], [0, 0, 1, 1], [], []>} : vector<16x128xbf16>, vector<128x128xbf16>, vector<16x128xf32> -> vector<16x128xf32>
    %c0_24 = arith.constant 0 : index
    %c0_25 = arith.constant 0 : index
    %37 = vector.load %arg9[%c0_24, %c0_25] : memref<1x128xf32, #tpu.memory_space<vmem>>, vector<1x128xf32>
    %38 = vector.broadcast %37 : vector<1x128xf32> to vector<16x128xf32>
    %39 = arith.addf %36, %38 : vector<16x128xf32>
    %c0_26 = arith.constant 0 : index
    %c0_27 = arith.constant 0 : index
    %40 = vector.load %arg10[%c0_26, %c0_27] : memref<16x128xf32, #tpu.memory_space<vmem>>, vector<16x128xf32>
    tpu.vector_store %arg10[%c0_26, %c0_27], %39 {strides = array<i32>} : memref<16x128xf32, #tpu.memory_space<vmem>>, vector<16x128xf32>,
    return
  }
  func.func @transform_0(%arg0: i32) -> (i32, i32) {
    %c0_i32 = arith.constant 0 : i32
    %c0_i32_0 = arith.constant 0 : i32
    return %arg0, %c0_i32 : i32, i32
  }
  func.func @transform_1(%arg0: i32) -> (i32, i32) {
    %c0_i32 = arith.constant 0 : i32
    %c0_i32_0 = arith.constant 0 : i32
    %c0_i32_1 = arith.constant 0 : i32
    return %c0_i32, %c0_i32_0 : i32, i32
  }
  func.func @transform_2(%arg0: i32) -> (i32, i32) {
    %c0_i32 = arith.constant 0 : i32
    %c0_i32_0 = arith.constant 0 : i32
    %c0_i32_1 = arith.constant 0 : i32
    return %c0_i32, %c0_i32_0 : i32, i32
  }
  func.func @transform_3(%arg0: i32) -> (i32, i32) {
    %c0_i32 = arith.constant 0 : i32
    %c0_i32_0 = arith.constant 0 : i32
    %c0_i32_1 = arith.constant 0 : i32
    return %c0_i32, %c0_i32_0 : i32, i32
  }
  func.func @transform_4(%arg0: i32) -> (i32, i32) {
    %c0_i32 = arith.constant 0 : i32
    %c0_i32_0 = arith.constant 0 : i32
    %c0_i32_1 = arith.constant 0 : i32
    return %c0_i32, %c0_i32_0 : i32, i32
  }
  func.func @transform_5(%arg0: i32) -> (i32, i32) {
    %c0_i32 = arith.constant 0 : i32
    %c0_i32_0 = arith.constant 0 : i32
    %c0_i32_1 = arith.constant 0 : i32
    return %c0_i32, %c0_i32_0 : i32, i32
  }
  func.func @transform_6(%arg0: i32) -> (i32, i32) {
    %c0_i32 = arith.constant 0 : i32
    %c0_i32_0 = arith.constant 0 : i32
    %c0_i32_1 = arith.constant 0 : i32
    return %c0_i32, %c0_i32_0 : i32, i32
  }
  func.func @transform_7(%arg0: i32) -> (i32, i32) {
    %c0_i32 = arith.constant 0 : i32
    %c0_i32_0 = arith.constant 0 : i32
    %c0_i32_1 = arith.constant 0 : i32
    return %c0_i32, %c0_i32_0 : i32, i32
  }
  func.func @transform_8(%arg0: i32) -> (i32, i32) {
    %c0_i32 = arith.constant 0 : i32
    %c0_i32_0 = arith.constant 0 : i32
    %c0_i32_1 = arith.constant 0 : i32
    return %c0_i32, %c0_i32_0 : i32, i32
  }
  func.func @transform_9(%arg0: i32) -> (i32, i32) {
    %c0_i32 = arith.constant 0 : i32
    %c0_i32_0 = arith.constant 0 : i32
    return %arg0, %c0_i32 : i32, i32
  }
}

module attributes {stable_mosaic.version = 11 : i64} {
  func.func @mlp_kernel(%arg0: i32, %arg1: memref<16x128xf32, #tpu.memory_space<vmem>>, %arg2: memref<128x128xbf16, #tpu.memory_space<vmem>>, %arg3: memref<1x128xf32, #tpu.memory_space<vmem>>, %arg4: memref<128x128xbf16, #tpu.memory_space<vmem>>, %arg5: memref<1x128xf32, #tpu.memory_space<vmem>>, %arg6: memref<128x128xbf16, #tpu.memory_space<vmem>>, %arg7: memref<1x128xf32, #tpu.memory_space<vmem>>, %arg8: memref<128x128xbf16, #tpu.memory_space<vmem>>, %arg9: memref<1x128xf32, #tpu.memory_space<vmem>>, %arg10: memref<16x128xf32, #tpu.memory_space<vmem>>) attributes {dimension_semantics = [#tpu.dimension_semantics<parallel>], iteration_bounds = array<i64: 1>, scalar_prefetch = 0 : i64, scratch_operands = 0 : i64, tpu.core_type = #tpu.core_type<tc>, window_params = [{transform_indices = @transform_0, window_bounds = array<i64: 16, 128>}, {pipeline_mode = #tpu.pipeline_mode<synchronous>, transform_indices = @transform_1, window_bounds = array<i64: 128, 128>}, {pipeline_mode = #tpu.pipeline_mode<synchronous>, transform_indices = @transform_2, window_bounds = array<i64: 1, 128>}, {pipeline_mode = #tpu.pipeline_mode<synchronous>, transform_indices = @transform_3, window_bounds = array<i64: 128, 128>}, {pipeline_mode = #tpu.pipeline_mode<synchronous>, transform_indices = @transform_4, window_bounds = array<i64: 1, 128>}, {pipeline_mode = #tpu.pipeline_mode<synchronous>, transform_indices = @transform_5, window_bounds = array<i64: 128, 128>}, {pipeline_mode = #tpu.pipeline_mode<synchronous>, transform_indices = @transform_6, window_bounds = array<i64: 1, 128>}, {pipeline_mode = #tpu.pipeline_mode<synchronous>, transform_indices = @transform_7, window_bounds = array<i64: 128, 128>}, {pipeline_mode = #tpu.pipeline_mode<synchronous>, transform_indices = @transform_8, window_bounds = array<i64: 1, 128>}, {transform_indices = @transform_9, window_bounds = array<i64: 16, 128>}]} {
    %c0 = arith.constant 0 : index
    %c0_0 = arith.constant 0 : index
    %0 = vector.load %arg1[%c0, %c0_0] : memref<16x128xf32, #tpu.memory_space<vmem>>, vector<16x128xf32>
    %1 = arith.truncf %0 : vector<16x128xf32> to vector<16x128xbf16>
    %c0_1 = arith.constant 0 : index
    %c0_2 = arith.constant 0 : index
    %2 = vector.load %arg2[%c0_1, %c0_2] : memref<128x128xbf16, #tpu.memory_space<vmem>>, vector<128x128xbf16>
    %cst = arith.constant dense<0.000000e+00> : vector<16x128xf32>
    %3 = tpu.matmul %1, %2, %cst {dimension_numbers = #tpu.dot_dimension_numbers<[1], [0], [0], [1], [0, 0, 1, 1], [], []>} : vector<16x128xbf16>, vector<128x128xbf16>, vector<16x128xf32> -> vector<16x128xf32>
    %c0_3 = arith.constant 0 : index
    %c0_4 = arith.constant 0 : index
    %4 = vector.load %arg3[%c0_3, %c0_4] : memref<1x128xf32, #tpu.memory_space<vmem>>, vector<1x128xf32>
    %5 = vector.broadcast %4 : vector<1x128xf32> to vector<16x128xf32>
    %6 = arith.addf %3, %5 : vector<16x128xf32>
    %cst_5 = arith.constant 0.000000e+00 : f32
    %7 = vector.broadcast %cst_5 : f32 to vector<16x128xf32>
    %8 = arith.cmpf ogt, %6, %7 : vector<16x128xf32>
    %cst_6 = arith.constant 2.000000e-01 : f32
    %9 = vector.broadcast %cst_6 : f32 to vector<16x128xf32>
    %10 = arith.mulf %9, %6 : vector<16x128xf32>
    %11 = arith.select %8, %6, %10 : vector<16x128xi1>, vector<16x128xf32>
    %12 = arith.truncf %11 : vector<16x128xf32> to vector<16x128xbf16>
    %c0_7 = arith.constant 0 : index
    %c0_8 = arith.constant 0 : index
    %13 = vector.load %arg4[%c0_7, %c0_8] : memref<128x128xbf16, #tpu.memory_space<vmem>>, vector<128x128xbf16>
    %cst_9 = arith.constant dense<0.000000e+00> : vector<16x128xf32>
    %14 = tpu.matmul %12, %13, %cst_9 {dimension_numbers = #tpu.dot_dimension_numbers<[1], [0], [0], [1], [0, 0, 1, 1], [], []>} : vector<16x128xbf16>, vector<128x128xbf16>, vector<16x128xf32> -> vector<16x128xf32>
    %c0_10 = arith.constant 0 : index
    %c0_11 = arith.constant 0 : index
    %15 = vector.load %arg5[%c0_10, %c0_11] : memref<1x128xf32, #tpu.memory_space<vmem>>, vector<1x128xf32>
    %16 = vector.broadcast %15 : vector<1x128xf32> to vector<16x128xf32>
    %17 = arith.addf %14, %16 : vector<16x128xf32>
    %cst_12 = arith.constant 0.000000e+00 : f32
    %18 = vector.broadcast %cst_12 : f32 to vector<16x128xf32>
    %19 = arith.cmpf ogt, %17, %18 : vector<16x128xf32>
    %cst_13 = arith.constant 2.000000e-01 : f32
    %20 = vector.broadcast %cst_13 : f32 to vector<16x128xf32>
    %21 = arith.mulf %20, %17 : vector<16x128xf32>
    %22 = arith.select %19, %17, %21 : vector<16x128xi1>, vector<16x128xf32>
    %23 = arith.truncf %22 : vector<16x128xf32> to vector<16x128xbf16>
    %c0_14 = arith.constant 0 : index
    %c0_15 = arith.constant 0 : index
    %24 = vector.load %arg6[%c0_14, %c0_15] : memref<128x128xbf16, #tpu.memory_space<vmem>>, vector<128x128xbf16>
    %cst_16 = arith.constant dense<0.000000e+00> : vector<16x128xf32>
    %25 = tpu.matmul %23, %24, %cst_16 {dimension_numbers = #tpu.dot_dimension_numbers<[1], [0], [0], [1], [0, 0, 1, 1], [], []>} : vector<16x128xbf16>, vector<128x128xbf16>, vector<16x128xf32> -> vector<16x128xf32>
    %c0_17 = arith.constant 0 : index
    %c0_18 = arith.constant 0 : index
    %26 = vector.load %arg7[%c0_17, %c0_18] : memref<1x128xf32, #tpu.memory_space<vmem>>, vector<1x128xf32>
    %27 = vector.broadcast %26 : vector<1x128xf32> to vector<16x128xf32>
    %28 = arith.addf %25, %27 : vector<16x128xf32>
    %cst_19 = arith.constant 0.000000e+00 : f32
    %29 = vector.broadcast %cst_19 : f32 to vector<16x128xf32>
    %30 = arith.cmpf ogt, %28, %29 : vector<16x128xf32>
    %cst_20 = arith.constant 2.000000e-01 : f32
    %31 = vector.broadcast %cst_20 : f32 to vector<16x128xf32>
    %32 = arith.mulf %31, %28 : vector<16x128xf32>
    %33 = arith.select %30, %28, %32 : vector<16x128xi1>, vector<16x128xf32>
    %34 = arith.truncf %33 : vector<16x128xf32> to vector<16x128xbf16>
    %c0_21 = arith.constant 0 : index
    %c0_22 = arith.constant 0 : index
    %35 = vector.load %arg8[%c0_21, %c0_22] : memref<128x128xbf16, #tpu.memory_space<vmem>>, vector<128x128xbf16>
    %cst_23 = arith.constant dense<0.000000e+00> : vector<16x128xf32>
    %36 = tpu.matmul %34, %35, %cst_23 {dimension_numbers = #tpu.dot_dimension_numbers<[1], [0], [0], [1], [0, 0, 1, 1], [], []>} : vector<16x128xbf16>, vector<128x128xbf16>, vector<16x128xf32> -> vector<16x128xf32>
    %c0_24 = arith.constant 0 : index
    %c0_25 = arith.constant 0 : index
    %37 = vector.load %arg9[%c0_24, %c0_25] : memref<1x128xf32, #tpu.memory_space<vmem>>, vector<1x128xf32>
    %38 = vector.broadcast %37 : vector<1x128xf32> to vector<16x128xf32>
    %39 = arith.addf %36, %38 : vector<16x128xf32>
    %c0_26 = arith.constant 0 : index
    %c0_27 = arith.constant 0 : index
    %40 = vector.load %arg10[%c0_26, %c0_27] : memref<16x128xf32, #tpu.memory_space<vmem>>, vector<16x128xf32>
    tpu.vector_store %arg10[%c0_26, %c0_27], %39 {strides = array<i32>} : memref<16x128xf32, #tpu.memory_space<vmem>>, vector<16x128xf32>,
    return
  }
  func.func @transform_0(%arg0: i32) -> (i32, i32) {
    %c0_i32 = arith.constant 0 : i32
    %c0_i32_0 = arith.constant 0 : i32
    return %arg0, %c0_i32 : i32, i32
  }
  func.func @transform_1(%arg0: i32) -> (i32, i32) {
    %c0_i32 = arith.constant 0 : i32
    %c0_i32_0 = arith.constant 0 : i32
    %c0_i32_1 = arith.constant 0 : i32
    return %c0_i32, %c0_i32_0 : i32, i32
  }
  func.func @transform_2(%arg0: i32) -> (i32, i32) {
    %c0_i32 = arith.constant 0 : i32
    %c0_i32_0 = arith.constant 0 : i32
    %c0_i32_1 = arith.constant 0 : i32
    return %c0_i32, %c0_i32_0 : i32, i32
  }
  func.func @transform_3(%arg0: i32) -> (i32, i32) {
    %c0_i32 = arith.constant 0 : i32
    %c0_i32_0 = arith.constant 0 : i32
    %c0_i32_1 = arith.constant 0 : i32
    return %c0_i32, %c0_i32_0 : i32, i32
  }
  func.func @transform_4(%arg0: i32) -> (i32, i32) {
    %c0_i32 = arith.constant 0 : i32
    %c0_i32_0 = arith.constant 0 : i32
    %c0_i32_1 = arith.constant 0 : i32
    return %c0_i32, %c0_i32_0 : i32, i32
  }
  func.func @transform_5(%arg0: i32) -> (i32, i32) {
    %c0_i32 = arith.constant 0 : i32
    %c0_i32_0 = arith.constant 0 : i32
    %c0_i32_1 = arith.constant 0 : i32
    return %c0_i32, %c0_i32_0 : i32, i32
  }
  func.func @transform_6(%arg0: i32) -> (i32, i32) {
    %c0_i32 = arith.constant 0 : i32
    %c0_i32_0 = arith.constant 0 : i32
    %c0_i32_1 = arith.constant 0 : i32
    return %c0_i32, %c0_i32_0 : i32, i32
  }
  func.func @transform_7(%arg0: i32) -> (i32, i32) {
    %c0_i32 = arith.constant 0 : i32
    %c0_i32_0 = arith.constant 0 : i32
    %c0_i32_1 = arith.constant 0 : i32
    return %c0_i32, %c0_i32_0 : i32, i32
  }
  func.func @transform_8(%arg0: i32) -> (i32, i32) {
    %c0_i32 = arith.constant 0 : i32
    %c0_i32_0 = arith.constant 0 : i32
    %c0_i32_1 = arith.constant 0 : i32
    return %c0_i32, %c0_i32_0 : i32, i32
  }
  func.func @transform_9(%arg0: i32) -> (i32, i32) {
    %c0_i32 = arith.constant 0 : i32
    %c0_i32_0 = arith.constant 0 : i32
    return %arg0, %c0_i32 : i32, i32
  }
}

</mosaic_0001>

<bundles_post_ra>
// kernel: _mlp_forward_impl.1
= control target key start
LH: loop header
LB: loop body
LE: loop exit
PB: predicated region body
PF: predicated region fallthrough
CT: control target
= control target key end

     0   :  { %14 = vsyncpa [#allocation3], 0  ;;  %s1051_s0 = inlined_call_operand.vmem [shape: f32[16,128], index: 0, kind: input, shape index: {}]   ;;  %s1052_s1 = inlined_call_operand.hbm [shape: bf16[128,128], index: 1, kind: input, shape index: {}]   ;;  %s1053_s2 = inlined_call_operand.vmem [shape: f32[1,128], index: 2, kind: input, shape index: {}]   ;;  %s1054_s3 = inlined_call_operand.hbm [shape: bf16[128,128], index: 3, kind: input, shape index: {}]   ;;  %s1055_s4 = inlined_call_operand.vmem [shape: f32[1,128], index: 4, kind: input, shape index: {}]   ;;  %s1056_s5 = inlined_call_operand.hbm [shape: bf16[128,128], index: 5, kind: input, shape index: {}]   ;;  %s1057_s6 = inlined_call_operand.vmem [shape: f32[1,128], index: 6, kind: input, shape index: {}]   ;;  %s1058_s7 = inlined_call_operand.hbm [shape: bf16[128,128], index: 7, kind: input, shape index: {}]   ;;  %s1059_s8 = inlined_call_operand.vmem [shape: f32[1,128], index: 8, kind: input, shape index: {}]   ;;  %s1060_s9 = inlined_call_operand.vmem [shape: f32[16,128], index: 9, kind: output, shape index: {}]  }
   0x1   :  { %15 = vsyncpa [#allocation5], 0 }
   0x2   :  { %16 = vsyncpa [#allocation8], 0  ;;  %s855_s30 = smov [#allocation4]   ;;  %s856_s11 = smov [#allocation2]  }
   0x3   :  { %s38_s10 = sshll.u32 %s855_s30, 4  ;;  %s24_s12 = sshll.u32 %s856_s11, 4  ;;  %s39_s10 = int_to_ptr.vmem [resolvable:$true] %s38_s10  ;;  %s913_s12 = int_to_ptr.vmem [resolvable:$true] %s24_s12 }
   0x4   :  { %s761_s15 = scalar_lea.hbm %s1054_s3, 1024 }
   0x5   :  { %p762_p0 = scmp.ne.s32.totalorder %s1054_s3, %s761_s15  ;;  %p765_p1 = scmp.lt.u32.totalorder %s761_s15, %s1054_s3 }
   0x7   :  { %p767_p2 = pnand %p765_p1, %p762_p0 }
   0x9   :  { %770 = shalt.err (!%p767_p2)
}
   0xa   :  { %s771_s20 = scalar_lea.vmem %s39_s10, 1024  ;;  %p776_p4 = scmp.lt.s32.totalorder %s39_s10, %s39_s10 }
   0xb   :  { %p772_p3 = scmp.ne.s32.totalorder %s39_s10, %s771_s20  ;;  %p777_p5 = scmp.lt.s32.totalorder %s771_s20, %s771_s20 }
   0xd   :  { %p778_p6 = por %p777_p5, %p776_p4 }
   0xf   :  { %p779_p7 = pnand %p778_p6, %p772_p3 }
  0x11   :  { %782 = shalt.err (!%p779_p7)
}
  0x12   :  { %s857_s21 = smov 64   ;;  %s858_s22 = smov 4  }
  0x13   :  { %44 = dma.hbm_to_vmem [thread:$0]  %s1054_s3, 1024, %s39_s10, [#allocation5], %s857_s21, %s857_s21, %s858_s22  }
  0x14   :  { %s783_s27 = scalar_lea.hbm %s1052_s1, 1024 }
  0x15   :  { %p784_p8 = scmp.ne.s32.totalorder %s1052_s1, %s783_s27  ;;  %p787_p9 = scmp.lt.u32.totalorder %s783_s27, %s1052_s1 }
  0x17   :  { %p789_p10 = pnand %p787_p9, %p784_p8 }
  0x19   :  { %792 = shalt.err (!%p789_p10)
}
  0x1a   :  { %s793_s13 = scalar_lea.vmem %s913_s12, 1024  ;;  %p798_p12 = scmp.lt.s32.totalorder %s913_s12, %s913_s12 }
  0x1b   :  { %p794_p11 = scmp.ne.s32.totalorder %s913_s12, %s793_s13  ;;  %p799_p13 = scmp.lt.s32.totalorder %s793_s13, %s793_s13 }
  0x1d   :  { %p800_p0 = por %p799_p13, %p798_p12 }
  0x1f   :  { %p801_p1 = pnand %p800_p0, %p794_p11 }
  0x21   :  { %804 = shalt.err (!%p801_p1)
}
  0x22   :  { %30 = dma.hbm_to_vmem [thread:$0]  %s1052_s1, 1024, %s913_s12, [#allocation3], %s857_s21, %s857_s21, %s858_s22  }
  0x23   :  { %s859_s14 = smov [#allocation6]   ;;  %s860_s16 = smov [#allocation7]  }
  0x24   :  { %s52_s15 = sshll.u32 %s859_s14, 4  ;;  %s66_s17 = sshll.u32 %s860_s16, 4  ;;  %s53_s15 = int_to_ptr.vmem [resolvable:$true] %s52_s15  ;;  %s950_s17 = int_to_ptr.vmem [resolvable:$true] %s66_s17 }
  0x25   :  { %s805_s20 = scalar_lea.hbm %s1056_s5, 1024 }
  0x26   :  { %p806_p2 = scmp.ne.s32.totalorder %s1056_s5, %s805_s20  ;;  %p809_p3 = scmp.lt.u32.totalorder %s805_s20, %s1056_s5 }
  0x28   :  { %p811_p4 = pnand %p809_p3, %p806_p2 }
  0x2a   :  { %814 = shalt.err (!%p811_p4)
}
  0x2b   :  { %s815_s1 = scalar_lea.vmem %s53_s15, 1024  ;;  %p820_p6 = scmp.lt.s32.totalorder %s53_s15, %s53_s15 }
  0x2c   :  { %p816_p5 = scmp.ne.s32.totalorder %s53_s15, %s815_s1  ;;  %p821_p7 = scmp.lt.s32.totalorder %s815_s1, %s815_s1 }
  0x2e   :  { %p822_p8 = por %p821_p7, %p820_p6 }
  0x30   :  { %p823_p9 = pnand %p822_p8, %p816_p5 }
  0x32   :  { %826 = shalt.err (!%p823_p9)
}
  0x33   :  { %58 = dma.hbm_to_vmem [thread:$0]  %s1056_s5, 1024, %s53_s15, [#allocation5], %s857_s21, %s857_s21, %s858_s22  }
  0x34   :  { %s827_s30 = scalar_lea.hbm %s1058_s7, 1024 }
  0x35   :  { %p828_p10 = scmp.ne.s32.totalorder %s1058_s7, %s827_s30  ;;  %p831_p11 = scmp.lt.u32.totalorder %s827_s30, %s1058_s7 }
  0x37   :  { %p833_p12 = pnand %p831_p11, %p828_p10 }
  0x39   :  { %836 = shalt.err (!%p833_p12)
}
  0x3a   :  { %s837_s14 = scalar_lea.vmem %s950_s17, 1024  ;;  %p842_p0 = scmp.lt.s32.totalorder %s950_s17, %s950_s17 }
  0x3b   :  { %p838_p13 = scmp.ne.s32.totalorder %s950_s17, %s837_s14  ;;  %p843_p1 = scmp.lt.s32.totalorder %s837_s14, %s837_s14 }
  0x3d   :  { %p844_p2 = por %p843_p1, %p842_p0 }
  0x3f   :  { %p845_p3 = pnand %p844_p2, %p838_p13 }
  0x41   :  { %848 = shalt.err (!%p845_p3)
}
  0x42   :  { %72 = dma.hbm_to_vmem [thread:$0]  %s1058_s7, 1024, %s950_s17, [#allocation8], %s857_s21, %s857_s21, %s858_s22  }
  0x43   :  { %849 = dma.done.wait [#allocation3], 1024  }
  0x44   :  { %850 = vsyncadd [#allocation3], 4294966272 }
  0x45   :  { %851 = dma.done.wait [#allocation5], 2048  }
  0x46   :  { %852 = vsyncadd [#allocation5], 4294965248 }
  0x47   :  { %853 = dma.done.wait [#allocation8], 1024  }
  0x48   :  { %854 = vsyncadd [#allocation8], 4294966272  ;;  %v861_v0 = vmov 0.0   ;;  %vm862_vm0 = vmmov 0   ;;  %v729_v1 = vld [vmem:[#allocation2] sm:$0xff]   ;;  %v730_v2 = vld [vmem:[#allocation2 + $0x8] sm:$0xff]  }
  0x49   :  { %641 = vmatprep.subr.bf16.mxu0 %v861_v0  ;;  %657 = vmatprep.mubr.msk.bf16.mxu0 %vm862_vm0, %v861_v0  ;;  %v731_v3 = vld [vmem:[#allocation2 + $0x10] sm:$0xff]   ;;  %v737_v4 = vld [vmem:[#allocation4] sm:$0xff]   ;;  %v732_v5 = vld [vmem:[#allocation2 + $0x18] sm:$0xff]  }
  0x4a   :  { %661 = vmatprep.subr.bf16.mxu1 %v861_v0  ;;  %677 = vmatprep.mubr.msk.bf16.mxu1 %vm862_vm0, %v861_v0  ;;  %v738_v6 = vld [vmem:[#allocation4 + $0x8] sm:$0xff]   ;;  %v733_v7 = vld [vmem:[#allocation2 + $0x20] sm:$0xff]   ;;  %v739_v8 = vld [vmem:[#allocation4 + $0x10] sm:$0xff]  }
  0x4b   :  { %642 = vmatpush3.bf16.msra.mxu0 %v729_v1  ;;  %662 = vmatpush3.bf16.msra.mxu1 %v737_v4  ;;  %v734_v9 = vld [vmem:[#allocation2 + $0x28] sm:$0xff]   ;;  %v740_v10 = vld [vmem:[#allocation4 + $0x18] sm:$0xff]   ;;  %v735_v11 = vld [vmem:[#allocation2 + $0x30] sm:$0xff]  }
  0x4c   :  { %643 = vmatprep.subr.bf16.mxu0 %v861_v0  ;;  %663 = vmatprep.subr.bf16.mxu1 %v861_v0  ;;  %v741_v12 = vld [vmem:[#allocation4 + $0x20] sm:$0xff]   ;;  %v736_v13 = vld [vmem:[#allocation2 + $0x38] sm:$0xff]   ;;  %v89_v15 = vld [vmem:[%s1051_s0 + $0x8] sm:$0xff] }
  0x4d   :  { %v88_v14 = vld [vmem:[%s1051_s0] sm:$0xff]  ;;  %v742_v16 = vld [vmem:[#allocation4 + $0x28] sm:$0xff]   ;;  %v743_v18 = vld [vmem:[#allocation4 + $0x30] sm:$0xff]  }
  0x4e   :  { %v90_v17 = vpack.c.bf16 %v89_v15, %v88_v14  ;;  %v744_v19 = vld [vmem:[#allocation4 + $0x38] sm:$0xff]   ;;  %v745_v20 = vld [vmem:[#allocation6] sm:$0xff]   ;;  %v746_v21 = vld [vmem:[#allocation6 + $0x8] sm:$0xff]  }
  0x4f   :  { %644 = vmatpush3.bf16.msra.mxu0 %v730_v2  ;;  %664 = vmatpush3.bf16.msra.mxu1 %v738_v6  ;;  %v747_v22 = vld [vmem:[#allocation6 + $0x10] sm:$0xff]   ;;  %v748_v23 = vld [vmem:[#allocation6 + $0x18] sm:$0xff]   ;;  %v749_v24 = vld [vmem:[#allocation6 + $0x20] sm:$0xff]  }
  0x50   :  { %645 = vmatprep.subr.bf16.mxu0 %v861_v0  ;;  %665 = vmatprep.subr.bf16.mxu1 %v861_v0  ;;  %v750_v25 = vld [vmem:[#allocation6 + $0x28] sm:$0xff]   ;;  %v569_v26 = vld [vmem:[%s1053_s2] ss:$0 sm:$0xff]  ;;  %v751_v38 = vld [vmem:[#allocation6 + $0x30] sm:$0xff]  }
  0x51   :  { %v752_v39 = vld [vmem:[#allocation6 + $0x38] sm:$0xff]   ;;  %v753_v40 = vld [vmem:[#allocation7] sm:$0xff]   ;;  %v754_v41 = vld [vmem:[#allocation7 + $0x8] sm:$0xff]  }
  0x52   :  { %v755_v42 = vld [vmem:[#allocation7 + $0x10] sm:$0xff]   ;;  %v756_v43 = vld [vmem:[#allocation7 + $0x18] sm:$0xff]   ;;  %v757_v44 = vld [vmem:[#allocation7 + $0x20] sm:$0xff]  }
  0x53   :  { %646 = vmatpush3.bf16.msra.mxu0 %v731_v3  ;;  %666 = vmatpush3.bf16.msra.mxu1 %v739_v8  ;;  %v758_v45 = vld [vmem:[#allocation7 + $0x28] sm:$0xff]   ;;  %v578_v46 = vld [vmem:[%s1055_s4] ss:$0 sm:$0xff]  ;;  %v759_v58 = vld [vmem:[#allocation7 + $0x30] sm:$0xff]  }
  0x54   :  { %647 = vmatprep.subr.bf16.mxu0 %v861_v0  ;;  %667 = vmatprep.subr.bf16.mxu1 %v861_v0  ;;  %v760_v59 = vld [vmem:[#allocation7 + $0x38] sm:$0xff]   ;;  %v587_v60 = vld [vmem:[%s1057_s6] ss:$0 sm:$0xff] }
  0x57   :  { %648 = vmatpush3.bf16.msra.mxu0 %v732_v5  ;;  %668 = vmatpush3.bf16.msra.mxu1 %v740_v10 }
  0x58   :  { %649 = vmatprep.subr.bf16.mxu0 %v861_v0  ;;  %669 = vmatprep.subr.bf16.mxu1 %v861_v0 }
  0x5b   :  { %650 = vmatpush3.bf16.msra.mxu0 %v733_v7  ;;  %670 = vmatpush3.bf16.msra.mxu1 %v741_v12 }
  0x5c   :  { %651 = vmatprep.subr.bf16.mxu0 %v861_v0  ;;  %671 = vmatprep.subr.bf16.mxu1 %v861_v0 }
  0x5f   :  { %652 = vmatpush3.bf16.msra.mxu0 %v734_v9  ;;  %672 = vmatpush3.bf16.msra.mxu1 %v742_v16 }
  0x60   :  { %653 = vmatprep.subr.bf16.mxu0 %v861_v0  ;;  %673 = vmatprep.subr.bf16.mxu1 %v861_v0 }
  0x63   :  { %654 = vmatpush3.bf16.msra.mxu0 %v735_v11  ;;  %674 = vmatpush3.bf16.msra.mxu1 %v743_v18 }
  0x64   :  { %655 = vmatprep.subr.bf16.mxu0 %v861_v0  ;;  %675 = vmatprep.subr.bf16.mxu1 %v861_v0 }
  0x67   :  { %656 = vmatpush3.bf16.msra.mxu0 %v736_v13  ;;  %676 = vmatpush3.bf16.msra.mxu1 %v744_v19 }
  0x68   :  { %681 = vmatprep.subr.bf16.mxu0 %v861_v0  ;;  %701 = vmatprep.subr.bf16.mxu1 %v861_v0 }
  0x6a   :  { %658 = vmatmul.mubr.bf16.vlgmr.msra.gmra.mrb[0].mxu0 %v90_v17 }
  0x6b   :  { %697 = vmatprep.mubr.msk.bf16.mxu0 %vm862_vm0, %v861_v0  ;;  %682 = vmatpush3.bf16.msra.mxu0 %v745_v20 }
  0x6c   :  { %683 = vmatprep.subr.bf16.mxu0 %v861_v0 }
  0x6f   :  { %684 = vmatpush3.bf16.msra.mxu0 %v746_v21 }
  0x70   :  { %685 = vmatprep.subr.bf16.mxu0 %v861_v0 }
  0x73   :  { %686 = vmatpush3.bf16.msra.mxu0 %v747_v22 }
  0x74   :  { %687 = vmatprep.subr.bf16.mxu0 %v861_v0 }
  0x77   :  { %688 = vmatpush3.bf16.msra.mxu0 %v748_v23 }
  0x78   :  { %689 = vmatprep.subr.bf16.mxu0 %v861_v0 }
  0x7b   :  { %690 = vmatpush3.bf16.msra.mxu0 %v749_v24 }
  0x7c   :  { %691 = vmatprep.subr.bf16.mxu0 %v861_v0 }
  0x7f   :  { %692 = vmatpush3.bf16.msra.mxu0 %v750_v25 }
  0x80   :  { %693 = vmatprep.subr.bf16.mxu0 %v861_v0 }
  0x83   :  { %694 = vmatpush3.bf16.msra.mxu0 %v751_v38 }
  0x84   :  { %695 = vmatprep.subr.bf16.mxu0 %v861_v0 }
  0x87   :  { %696 = vmatpush3.bf16.msra.mxu0 %v752_v39 }
 0x13d   :  { %v196_v27 = vpop.f32.mrb[0].mxu0 }
 0x13e   :  { %v197_v28 = vadd.f32 %v569_v26, %v196_v27  ;;  %v659_v29 = vpop.f32.mrb[1].mxu0 }
 0x13f   :  { %v199_v30 = vpop.f32.mrb[2].mxu0 }
 0x140   :  { %v205_v31 = vmul.f32 0.2, %v197_v28  ;;  %v200_v32 = vadd.f32 %v569_v26, %v199_v30  ;;  %v660_v33 = vpop.f32.mrb[3].mxu0  ;;  %vm203_vm1 = vcmp.gt.f32.partialorder %v197_v28, 0.0 }
 0x142   :  { %vm204_vm2 = vcmp.gt.f32.partialorder %v200_v32, 0.0  ;;  %v206_v34 = vmul.f32 0.2, %v200_v32  ;;  %v207_v35 = vsel %vm203_vm1, %v197_v28, %v205_v31 }
 0x144   :  { %v208_v36 = vsel %vm204_vm2, %v200_v32, %v206_v34 }
 0x145   :  { %v209_v37 = vpack.c.bf16 %v208_v36, %v207_v35 }
 0x147   :  { %678 = vmatmul.mubr.bf16.vlgmr.msra.gmra.mrb[0].mxu1 %v209_v37 }
 0x148   :  { %717 = vmatprep.mubr.msk.bf16.mxu1 %vm862_vm0, %v861_v0  ;;  %702 = vmatpush3.bf16.msra.mxu1 %v753_v40 }
 0x149   :  { %703 = vmatprep.subr.bf16.mxu1 %v861_v0 }
 0x14c   :  { %704 = vmatpush3.bf16.msra.mxu1 %v754_v41 }
 0x14d   :  { %705 = vmatprep.subr.bf16.mxu1 %v861_v0 }
 0x150   :  { %706 = vmatpush3.bf16.msra.mxu1 %v755_v42 }
 0x151   :  { %707 = vmatprep.subr.bf16.mxu1 %v861_v0 }
 0x154   :  { %708 = vmatpush3.bf16.msra.mxu1 %v756_v43 }
 0x155   :  { %709 = vmatprep.subr.bf16.mxu1 %v861_v0 }
 0x158   :  { %710 = vmatpush3.bf16.msra.mxu1 %v757_v44 }
 0x159   :  { %711 = vmatprep.subr.bf16.mxu1 %v861_v0 }
 0x15c   :  { %712 = vmatpush3.bf16.msra.mxu1 %v758_v45 }
 0x15d   :  { %713 = vmatprep.subr.bf16.mxu1 %v861_v0 }
 0x160   :  { %714 = vmatpush3.bf16.msra.mxu1 %v759_v58 }
 0x161   :  { %715 = vmatprep.subr.bf16.mxu1 %v861_v0  ;;  %v596_v0 = vld [vmem:[%s1059_s8] ss:$0 sm:$0xff] }
 0x164   :  { %716 = vmatpush3.bf16.msra.mxu1 %v760_v59 }
 0x21a   :  { %v315_v47 = vpop.f32.mrb[0].mxu1 }
 0x21b   :  { %v316_v48 = vadd.f32 %v578_v46, %v315_v47  ;;  %v679_v49 = vpop.f32.mrb[1].mxu1 }
 0x21c   :  { %v318_v50 = vpop.f32.mrb[2].mxu1 }
 0x21d   :  { %v324_v51 = vmul.f32 0.2, %v316_v48  ;;  %v319_v52 = vadd.f32 %v578_v46, %v318_v50  ;;  %v680_v53 = vpop.f32.mrb[3].mxu1  ;;  %vm322_vm3 = vcmp.gt.f32.partialorder %v316_v48, 0.0 }
 0x21f   :  { %vm323_vm4 = vcmp.gt.f32.partialorder %v319_v52, 0.0  ;;  %v325_v54 = vmul.f32 0.2, %v319_v52  ;;  %v326_v55 = vsel %vm322_vm3, %v316_v48, %v324_v51 }
 0x221   :  { %v327_v56 = vsel %vm323_vm4, %v319_v52, %v325_v54 }
 0x222   :  { %v328_v57 = vpack.c.bf16 %v327_v56, %v326_v55 }
 0x224   :  { %698 = vmatmul.mubr.bf16.vlgmr.msra.gmra.mrb[4].mxu0 %v328_v57 }
 0x2f7   :  { %v434_v61 = vpop.f32.mrb[4].mxu0 }
 0x2f8   :  { %v435_v62 = vadd.f32 %v587_v60, %v434_v61  ;;  %v699_v63 = vpop.f32.mrb[5].mxu0 }
 0x2f9   :  { %v437_v1 = vpop.f32.mrb[6].mxu0 }
 0x2fa   :  { %v443_v2 = vmul.f32 0.2, %v435_v62  ;;  %v438_v3 = vadd.f32 %v587_v60, %v437_v1  ;;  %v700_v4 = vpop.f32.mrb[7].mxu0  ;;  %vm441_vm5 = vcmp.gt.f32.partialorder %v435_v62, 0.0 }
 0x2fc   :  { %vm442_vm6 = vcmp.gt.f32.partialorder %v438_v3, 0.0  ;;  %v444_v5 = vmul.f32 0.2, %v438_v3  ;;  %v445_v6 = vsel %vm441_vm5, %v435_v62, %v443_v2 }
 0x2fe   :  { %v446_v7 = vsel %vm442_vm6, %v438_v3, %v444_v5 }
 0x2ff   :  { %v447_v8 = vpack.c.bf16 %v446_v7, %v445_v6 }
 0x301   :  { %718 = vmatmul.mubr.bf16.vlgmr.msra.gmra.mrb[4].mxu1 %v447_v8 }
 0x3d4   :  { %v553_v9 = vpop.f32.mrb[4].mxu1 }
 0x3d5   :  { %v554_v10 = vadd.f32 %v596_v0, %v553_v9  ;;  %v719_v11 = vpop.f32.mrb[5].mxu1 }
 0x3d6   :  { %v556_v12 = vpop.f32.mrb[6].mxu1 }
 0x3d7   :  { %560 = vst [vmem:[%s1060_s9] sm:$0xff] %v554_v10  ;;  %v557_v13 = vadd.f32 %v596_v0, %v556_v12  ;;  %v720_v14 = vpop.f32.mrb[7].mxu1 }
 0x3d9   :  { %561 = vst [vmem:[%s1060_s9 + $0x8] sm:$0xff] %v557_v13 }
 0x3da   :  { %566 = vsyncpa [#allocation3], 1 }
 0x3db   :  { %567 = vsyncpa [#allocation5], 1 }
 0x3dc   :  { %568 = vsyncpa [#allocation8], 1 }

// kernel: _mlp_forward_impl.1
= control target key start
LH: loop header
LB: loop body
LE: loop exit
PB: predicated region body
PF: predicated region fallthrough
CT: control target
= control target key end

     0   :  { %14 = vsyncpa [#allocation3], 0  ;;  %s1051_s0 = inlined_call_operand.vmem [shape: f32[16,128], index: 0, kind: input, shape index: {}]   ;;  %s1052_s1 = inlined_call_operand.hbm [shape: bf16[128,128], index: 1, kind: input, shape index: {}]   ;;  %s1053_s2 = inlined_call_operand.vmem [shape: f32[1,128], index: 2, kind: input, shape index: {}]   ;;  %s1054_s3 = inlined_call_operand.hbm [shape: bf16[128,128], index: 3, kind: input, shape index: {}]   ;;  %s1055_s4 = inlined_call_operand.vmem [shape: f32[1,128], index: 4, kind: input, shape index: {}]   ;;  %s1056_s5 = inlined_call_operand.hbm [shape: bf16[128,128], index: 5, kind: input, shape index: {}]   ;;  %s1057_s6 = inlined_call_operand.vmem [shape: f32[1,128], index: 6, kind: input, shape index: {}]   ;;  %s1058_s7 = inlined_call_operand.hbm [shape: bf16[128,128], index: 7, kind: input, shape index: {}]   ;;  %s1059_s8 = inlined_call_operand.vmem [shape: f32[1,128], index: 8, kind: input, shape index: {}]   ;;  %s1060_s9 = inlined_call_operand.vmem [shape: f32[16,128], index: 9, kind: output, shape index: {}]  }
   0x1   :  { %15 = vsyncpa [#allocation5], 0 }
   0x2   :  { %16 = vsyncpa [#allocation8], 0  ;;  %s855_s30 = smov [#allocation4]   ;;  %s856_s11 = smov [#allocation2]  }
   0x3   :  { %s38_s10 = sshll.u32 %s855_s30, 4  ;;  %s24_s12 = sshll.u32 %s856_s11, 4  ;;  %s39_s10 = int_to_ptr.vmem [resolvable:$true] %s38_s10  ;;  %s913_s12 = int_to_ptr.vmem [resolvable:$true] %s24_s12 }
   0x4   :  { %s761_s15 = scalar_lea.hbm %s1054_s3, 1024 }
   0x5   :  { %p762_p0 = scmp.ne.s32.totalorder %s1054_s3, %s761_s15  ;;  %p765_p1 = scmp.lt.u32.totalorder %s761_s15, %s1054_s3 }
   0x7   :  { %p767_p2 = pnand %p765_p1, %p762_p0 }
   0x9   :  { %770 = shalt.err (!%p767_p2)
}
   0xa   :  { %s771_s20 = scalar_lea.vmem %s39_s10, 1024  ;;  %p776_p4 = scmp.lt.s32.totalorder %s39_s10, %s39_s10 }
   0xb   :  { %p772_p3 = scmp.ne.s32.totalorder %s39_s10, %s771_s20  ;;  %p777_p5 = scmp.lt.s32.totalorder %s771_s20, %s771_s20 }
   0xd   :  { %p778_p6 = por %p777_p5, %p776_p4 }
   0xf   :  { %p779_p7 = pnand %p778_p6, %p772_p3 }
  0x11   :  { %782 = shalt.err (!%p779_p7)
}
  0x12   :  { %s857_s21 = smov 64   ;;  %s858_s22 = smov 4  }
  0x13   :  { %44 = dma.hbm_to_vmem [thread:$0]  %s1054_s3, 1024, %s39_s10, [#allocation5], %s857_s21, %s857_s21, %s858_s22  }
  0x14   :  { %s783_s27 = scalar_lea.hbm %s1052_s1, 1024 }
  0x15   :  { %p784_p8 = scmp.ne.s32.totalorder %s1052_s1, %s783_s27  ;;  %p787_p9 = scmp.lt.u32.totalorder %s783_s27, %s1052_s1 }
  0x17   :  { %p789_p10 = pnand %p787_p9, %p784_p8 }
  0x19   :  { %792 = shalt.err (!%p789_p10)
}
  0x1a   :  { %s793_s13 = scalar_lea.vmem %s913_s12, 1024  ;;  %p798_p12 = scmp.lt.s32.totalorder %s913_s12, %s913_s12 }
  0x1b   :  { %p794_p11 = scmp.ne.s32.totalorder %s913_s12, %s793_s13  ;;  %p799_p13 = scmp.lt.s32.totalorder %s793_s13, %s793_s13 }
  0x1d   :  { %p800_p0 = por %p799_p13, %p798_p12 }
  0x1f   :  { %p801_p1 = pnand %p800_p0, %p794_p11 }
  0x21   :  { %804 = shalt.err (!%p801_p1)
}
  0x22   :  { %30 = dma.hbm_to_vmem [thread:$0]  %s1052_s1, 1024, %s913_s12, [#allocation3], %s857_s21, %s857_s21, %s858_s22  }
  0x23   :  { %s859_s14 = smov [#allocation6]   ;;  %s860_s16 = smov [#allocation7]  }
  0x24   :  { %s52_s15 = sshll.u32 %s859_s14, 4  ;;  %s66_s17 = sshll.u32 %s860_s16, 4  ;;  %s53_s15 = int_to_ptr.vmem [resolvable:$true] %s52_s15  ;;  %s950_s17 = int_to_ptr.vmem [resolvable:$true] %s66_s17 }
  0x25   :  { %s805_s20 = scalar_lea.hbm %s1056_s5, 1024 }
  0x26   :  { %p806_p2 = scmp.ne.s32.totalorder %s1056_s5, %s805_s20  ;;  %p809_p3 = scmp.lt.u32.totalorder %s805_s20, %s1056_s5 }
  0x28   :  { %p811_p4 = pnand %p809_p3, %p806_p2 }
  0x2a   :  { %814 = shalt.err (!%p811_p4)
}
  0x2b   :  { %s815_s1 = scalar_lea.vmem %s53_s15, 1024  ;;  %p820_p6 = scmp.lt.s32.totalorder %s53_s15, %s53_s15 }
  0x2c   :  { %p816_p5 = scmp.ne.s32.totalorder %s53_s15, %s815_s1  ;;  %p821_p7 = scmp.lt.s32.totalorder %s815_s1, %s815_s1 }
  0x2e   :  { %p822_p8 = por %p821_p7, %p820_p6 }
  0x30   :  { %p823_p9 = pnand %p822_p8, %p816_p5 }
  0x32   :  { %826 = shalt.err (!%p823_p9)
}
  0x33   :  { %58 = dma.hbm_to_vmem [thread:$0]  %s1056_s5, 1024, %s53_s15, [#allocation5], %s857_s21, %s857_s21, %s858_s22  }
  0x34   :  { %s827_s30 = scalar_lea.hbm %s1058_s7, 1024 }
  0x35   :  { %p828_p10 = scmp.ne.s32.totalorder %s1058_s7, %s827_s30  ;;  %p831_p11 = scmp.lt.u32.totalorder %s827_s30, %s1058_s7 }
  0x37   :  { %p833_p12 = pnand %p831_p11, %p828_p10 }
  0x39   :  { %836 = shalt.err (!%p833_p12)
}
  0x3a   :  { %s837_s14 = scalar_lea.vmem %s950_s17, 1024  ;;  %p842_p0 = scmp.lt.s32.totalorder %s950_s17, %s950_s17 }
  0x3b   :  { %p838_p13 = scmp.ne.s32.totalorder %s950_s17, %s837_s14  ;;  %p843_p1 = scmp.lt.s32.totalorder %s837_s14, %s837_s14 }
  0x3d   :  { %p844_p2 = por %p843_p1, %p842_p0 }
  0x3f   :  { %p845_p3 = pnand %p844_p2, %p838_p13 }
  0x41   :  { %848 = shalt.err (!%p845_p3)
}
  0x42   :  { %72 = dma.hbm_to_vmem [thread:$0]  %s1058_s7, 1024, %s950_s17, [#allocation8], %s857_s21, %s857_s21, %s858_s22  }
  0x43   :  { %849 = dma.done.wait [#allocation3], 1024  }
  0x44   :  { %850 = vsyncadd [#allocation3], 4294966272 }
  0x45   :  { %851 = dma.done.wait [#allocation5], 2048  }
  0x46   :  { %852 = vsyncadd [#allocation5], 4294965248 }
  0x47   :  { %853 = dma.done.wait [#allocation8], 1024  }
  0x48   :  { %854 = vsyncadd [#allocation8], 4294966272  ;;  %v861_v0 = vmov 0.0   ;;  %vm862_vm0 = vmmov 0   ;;  %v729_v1 = vld [vmem:[#allocation2] sm:$0xff]   ;;  %v730_v2 = vld [vmem:[#allocation2 + $0x8] sm:$0xff]  }
  0x49   :  { %641 = vmatprep.subr.bf16.mxu0 %v861_v0  ;;  %657 = vmatprep.mubr.msk.bf16.mxu0 %vm862_vm0, %v861_v0  ;;  %v731_v3 = vld [vmem:[#allocation2 + $0x10] sm:$0xff]   ;;  %v737_v4 = vld [vmem:[#allocation4] sm:$0xff]   ;;  %v732_v5 = vld [vmem:[#allocation2 + $0x18] sm:$0xff]  }
  0x4a   :  { %661 = vmatprep.subr.bf16.mxu1 %v861_v0  ;;  %677 = vmatprep.mubr.msk.bf16.mxu1 %vm862_vm0, %v861_v0  ;;  %v738_v6 = vld [vmem:[#allocation4 + $0x8] sm:$0xff]   ;;  %v733_v7 = vld [vmem:[#allocation2 + $0x20] sm:$0xff]   ;;  %v739_v8 = vld [vmem:[#allocation4 + $0x10] sm:$0xff]  }
  0x4b   :  { %642 = vmatpush3.bf16.msra.mxu0 %v729_v1  ;;  %662 = vmatpush3.bf16.msra.mxu1 %v737_v4  ;;  %v734_v9 = vld [vmem:[#allocation2 + $0x28] sm:$0xff]   ;;  %v740_v10 = vld [vmem:[#allocation4 + $0x18] sm:$0xff]   ;;  %v735_v11 = vld [vmem:[#allocation2 + $0x30] sm:$0xff]  }
  0x4c   :  { %643 = vmatprep.subr.bf16.mxu0 %v861_v0  ;;  %663 = vmatprep.subr.bf16.mxu1 %v861_v0  ;;  %v741_v12 = vld [vmem:[#allocation4 + $0x20] sm:$0xff]   ;;  %v736_v13 = vld [vmem:[#allocation2 + $0x38] sm:$0xff]   ;;  %v89_v15 = vld [vmem:[%s1051_s0 + $0x8] sm:$0xff] }
  0x4d   :  { %v88_v14 = vld [vmem:[%s1051_s0] sm:$0xff]  ;;  %v742_v16 = vld [vmem:[#allocation4 + $0x28] sm:$0xff]   ;;  %v743_v18 = vld [vmem:[#allocation4 + $0x30] sm:$0xff]  }
  0x4e   :  { %v90_v17 = vpack.c.bf16 %v89_v15, %v88_v14  ;;  %v744_v19 = vld [vmem:[#allocation4 + $0x38] sm:$0xff]   ;;  %v745_v20 = vld [vmem:[#allocation6] sm:$0xff]   ;;  %v746_v21 = vld [vmem:[#allocation6 + $0x8] sm:$0xff]  }
  0x4f   :  { %644 = vmatpush3.bf16.msra.mxu0 %v730_v2  ;;  %664 = vmatpush3.bf16.msra.mxu1 %v738_v6  ;;  %v747_v22 = vld [vmem:[#allocation6 + $0x10] sm:$0xff]   ;;  %v748_v23 = vld [vmem:[#allocation6 + $0x18] sm:$0xff]   ;;  %v749_v24 = vld [vmem:[#allocation6 + $0x20] sm:$0xff]  }
  0x50   :  { %645 = vmatprep.subr.bf16.mxu0 %v861_v0  ;;  %665 = vmatprep.subr.bf16.mxu1 %v861_v0  ;;  %v750_v25 = vld [vmem:[#allocation6 + $0x28] sm:$0xff]   ;;  %v569_v26 = vld [vmem:[%s1053_s2] ss:$0 sm:$0xff]  ;;  %v751_v38 = vld [vmem:[#allocation6 + $0x30] sm:$0xff]  }
  0x51   :  { %v752_v39 = vld [vmem:[#allocation6 + $0x38] sm:$0xff]   ;;  %v753_v40 = vld [vmem:[#allocation7] sm:$0xff]   ;;  %v754_v41 = vld [vmem:[#allocation7 + $0x8] sm:$0xff]  }
  0x52   :  { %v755_v42 = vld [vmem:[#allocation7 + $0x10] sm:$0xff]   ;;  %v756_v43 = vld [vmem:[#allocation7 + $0x18] sm:$0xff]   ;;  %v757_v44 = vld [vmem:[#allocation7 + $0x20] sm:$0xff]  }
  0x53   :  { %646 = vmatpush3.bf16.msra.mxu0 %v731_v3  ;;  %666 = vmatpush3.bf16.msra.mxu1 %v739_v8  ;;  %v758_v45 = vld [vmem:[#allocation7 + $0x28] sm:$0xff]   ;;  %v578_v46 = vld [vmem:[%s1055_s4] ss:$0 sm:$0xff]  ;;  %v759_v58 = vld [vmem:[#allocation7 + $0x30] sm:$0xff]  }
  0x54   :  { %647 = vmatprep.subr.bf16.mxu0 %v861_v0  ;;  %667 = vmatprep.subr.bf16.mxu1 %v861_v0  ;;  %v760_v59 = vld [vmem:[#allocation7 + $0x38] sm:$0xff]   ;;  %v587_v60 = vld [vmem:[%s1057_s6] ss:$0 sm:$0xff] }
  0x57   :  { %648 = vmatpush3.bf16.msra.mxu0 %v732_v5  ;;  %668 = vmatpush3.bf16.msra.mxu1 %v740_v10 }
  0x58   :  { %649 = vmatprep.subr.bf16.mxu0 %v861_v0  ;;  %669 = vmatprep.subr.bf16.mxu1 %v861_v0 }
  0x5b   :  { %650 = vmatpush3.bf16.msra.mxu0 %v733_v7  ;;  %670 = vmatpush3.bf16.msra.mxu1 %v741_v12 }
  0x5c   :  { %651 = vmatprep.subr.bf16.mxu0 %v861_v0  ;;  %671 = vmatprep.subr.bf16.mxu1 %v861_v0 }
  0x5f   :  { %652 = vmatpush3.bf16.msra.mxu0 %v734_v9  ;;  %672 = vmatpush3.bf16.msra.mxu1 %v742_v16 }
  0x60   :  { %653 = vmatprep.subr.bf16.mxu0 %v861_v0  ;;  %673 = vmatprep.subr.bf16.mxu1 %v861_v0 }
  0x63   :  { %654 = vmatpush3.bf16.msra.mxu0 %v735_v11  ;;  %674 = vmatpush3.bf16.msra.mxu1 %v743_v18 }
  0x64   :  { %655 = vmatprep.subr.bf16.mxu0 %v861_v0  ;;  %675 = vmatprep.subr.bf16.mxu1 %v861_v0 }
  0x67   :  { %656 = vmatpush3.bf16.msra.mxu0 %v736_v13  ;;  %676 = vmatpush3.bf16.msra.mxu1 %v744_v19 }
  0x68   :  { %681 = vmatprep.subr.bf16.mxu0 %v861_v0  ;;  %701 = vmatprep.subr.bf16.mxu1 %v861_v0 }
  0x6a   :  { %658 = vmatmul.mubr.bf16.vlgmr.msra.gmra.mrb[0].mxu0 %v90_v17 }
  0x6b   :  { %697 = vmatprep.mubr.msk.bf16.mxu0 %vm862_vm0, %v861_v0  ;;  %682 = vmatpush3.bf16.msra.mxu0 %v745_v20 }
  0x6c   :  { %683 = vmatprep.subr.bf16.mxu0 %v861_v0 }
  0x6f   :  { %684 = vmatpush3.bf16.msra.mxu0 %v746_v21 }
  0x70   :  { %685 = vmatprep.subr.bf16.mxu0 %v861_v0 }
  0x73   :  { %686 = vmatpush3.bf16.msra.mxu0 %v747_v22 }
  0x74   :  { %687 = vmatprep.subr.bf16.mxu0 %v861_v0 }
  0x77   :  { %688 = vmatpush3.bf16.msra.mxu0 %v748_v23 }
  0x78   :  { %689 = vmatprep.subr.bf16.mxu0 %v861_v0 }
  0x7b   :  { %690 = vmatpush3.bf16.msra.mxu0 %v749_v24 }
  0x7c   :  { %691 = vmatprep.subr.bf16.mxu0 %v861_v0 }
  0x7f   :  { %692 = vmatpush3.bf16.msra.mxu0 %v750_v25 }
  0x80   :  { %693 = vmatprep.subr.bf16.mxu0 %v861_v0 }
  0x83   :  { %694 = vmatpush3.bf16.msra.mxu0 %v751_v38 }
  0x84   :  { %695 = vmatprep.subr.bf16.mxu0 %v861_v0 }
  0x87   :  { %696 = vmatpush3.bf16.msra.mxu0 %v752_v39 }
 0x13d   :  { %v196_v27 = vpop.f32.mrb[0].mxu0 }
 0x13e   :  { %v197_v28 = vadd.f32 %v569_v26, %v196_v27  ;;  %v659_v29 = vpop.f32.mrb[1].mxu0 }
 0x13f   :  { %v199_v30 = vpop.f32.mrb[2].mxu0 }
 0x140   :  { %v205_v31 = vmul.f32 0.2, %v197_v28  ;;  %v200_v32 = vadd.f32 %v569_v26, %v199_v30  ;;  %v660_v33 = vpop.f32.mrb[3].mxu0  ;;  %vm203_vm1 = vcmp.gt.f32.partialorder %v197_v28, 0.0 }
 0x142   :  { %vm204_vm2 = vcmp.gt.f32.partialorder %v200_v32, 0.0  ;;  %v206_v34 = vmul.f32 0.2, %v200_v32  ;;  %v207_v35 = vsel %vm203_vm1, %v197_v28, %v205_v31 }
 0x144   :  { %v208_v36 = vsel %vm204_vm2, %v200_v32, %v206_v34 }
 0x145   :  { %v209_v37 = vpack.c.bf16 %v208_v36, %v207_v35 }
 0x147   :  { %678 = vmatmul.mubr.bf16.vlgmr.msra.gmra.mrb[0].mxu1 %v209_v37 }
 0x148   :  { %717 = vmatprep.mubr.msk.bf16.mxu1 %vm862_vm0, %v861_v0  ;;  %702 = vmatpush3.bf16.msra.mxu1 %v753_v40 }
 0x149   :  { %703 = vmatprep.subr.bf16.mxu1 %v861_v0 }
 0x14c   :  { %704 = vmatpush3.bf16.msra.mxu1 %v754_v41 }
 0x14d   :  { %705 = vmatprep.subr.bf16.mxu1 %v861_v0 }
 0x150   :  { %706 = vmatpush3.bf16.msra.mxu1 %v755_v42 }
 0x151   :  { %707 = vmatprep.subr.bf16.mxu1 %v861_v0 }
 0x154   :  { %708 = vmatpush3.bf16.msra.mxu1 %v756_v43 }
 0x155   :  { %709 = vmatprep.subr.bf16.mxu1 %v861_v0 }
 0x158   :  { %710 = vmatpush3.bf16.msra.mxu1 %v757_v44 }
 0x159   :  { %711 = vmatprep.subr.bf16.mxu1 %v861_v0 }
 0x15c   :  { %712 = vmatpush3.bf16.msra.mxu1 %v758_v45 }
 0x15d   :  { %713 = vmatprep.subr.bf16.mxu1 %v861_v0 }
 0x160   :  { %714 = vmatpush3.bf16.msra.mxu1 %v759_v58 }
 0x161   :  { %715 = vmatprep.subr.bf16.mxu1 %v861_v0  ;;  %v596_v0 = vld [vmem:[%s1059_s8] ss:$0 sm:$0xff] }
 0x164   :  { %716 = vmatpush3.bf16.msra.mxu1 %v760_v59 }
 0x21a   :  { %v315_v47 = vpop.f32.mrb[0].mxu1 }
 0x21b   :  { %v316_v48 = vadd.f32 %v578_v46, %v315_v47  ;;  %v679_v49 = vpop.f32.mrb[1].mxu1 }
 0x21c   :  { %v318_v50 = vpop.f32.mrb[2].mxu1 }
 0x21d   :  { %v324_v51 = vmul.f32 0.2, %v316_v48  ;;  %v319_v52 = vadd.f32 %v578_v46, %v318_v50  ;;  %v680_v53 = vpop.f32.mrb[3].mxu1  ;;  %vm322_vm3 = vcmp.gt.f32.partialorder %v316_v48, 0.0 }
 0x21f   :  { %vm323_vm4 = vcmp.gt.f32.partialorder %v319_v52, 0.0  ;;  %v325_v54 = vmul.f32 0.2, %v319_v52  ;;  %v326_v55 = vsel %vm322_vm3, %v316_v48, %v324_v51 }
 0x221   :  { %v327_v56 = vsel %vm323_vm4, %v319_v52, %v325_v54 }
 0x222   :  { %v328_v57 = vpack.c.bf16 %v327_v56, %v326_v55 }
 0x224   :  { %698 = vmatmul.mubr.bf16.vlgmr.msra.gmra.mrb[4].mxu0 %v328_v57 }
 0x2f7   :  { %v434_v61 = vpop.f32.mrb[4].mxu0 }
 0x2f8   :  { %v435_v62 = vadd.f32 %v587_v60, %v434_v61  ;;  %v699_v63 = vpop.f32.mrb[5].mxu0 }
 0x2f9   :  { %v437_v1 = vpop.f32.mrb[6].mxu0 }
 0x2fa   :  { %v443_v2 = vmul.f32 0.2, %v435_v62  ;;  %v438_v3 = vadd.f32 %v587_v60, %v437_v1  ;;  %v700_v4 = vpop.f32.mrb[7].mxu0  ;;  %vm441_vm5 = vcmp.gt.f32.partialorder %v435_v62, 0.0 }
 0x2fc   :  { %vm442_vm6 = vcmp.gt.f32.partialorder %v438_v3, 0.0  ;;  %v444_v5 = vmul.f32 0.2, %v438_v3  ;;  %v445_v6 = vsel %vm441_vm5, %v435_v62, %v443_v2 }
 0x2fe   :  { %v446_v7 = vsel %vm442_vm6, %v438_v3, %v444_v5 }
 0x2ff   :  { %v447_v8 = vpack.c.bf16 %v446_v7, %v445_v6 }
 0x301   :  { %718 = vmatmul.mubr.bf16.vlgmr.msra.gmra.mrb[4].mxu1 %v447_v8 }
 0x3d4   :  { %v553_v9 = vpop.f32.mrb[4].mxu1 }
 0x3d5   :  { %v554_v10 = vadd.f32 %v596_v0, %v553_v9  ;;  %v719_v11 = vpop.f32.mrb[5].mxu1 }
 0x3d6   :  { %v556_v12 = vpop.f32.mrb[6].mxu1 }
 0x3d7   :  { %560 = vst [vmem:[%s1060_s9] sm:$0xff] %v554_v10  ;;  %v557_v13 = vadd.f32 %v596_v0, %v556_v12  ;;  %v720_v14 = vpop.f32.mrb[7].mxu1 }
 0x3d9   :  { %561 = vst [vmem:[%s1060_s9 + $0x8] sm:$0xff] %v557_v13 }
 0x3da   :  { %566 = vsyncpa [#allocation3], 1 }
 0x3db   :  { %567 = vsyncpa [#allocation5], 1 }
 0x3dc   :  { %568 = vsyncpa [#allocation8], 1 }

</bundles_post_ra>
